<compile_context>
chip_gen: v6e
topology: v6e:2x2x1
jax: 0.10.0
libtpu: 0.0.40
codegen_flags: <defaults>
</compile_context>

<pallas_src>
import jax
import jax.numpy as jnp
from jax.experimental import pallas as pl
from jax.experimental.pallas import tpu as pltpu


def _layernorm_f32(x, gamma, beta, eps=1e-12):
    # PyTorch LayerNorm: biased variance over the last dim; all math in f32.
    mean = jnp.mean(x, axis=-1, keepdims=True)
    xc = x - mean
    var = jnp.mean(xc * xc, axis=-1, keepdims=True)
    return xc * jax.lax.rsqrt(var + eps) * gamma + beta


def _visual_feat_encoder_kernel(feats_ref, boxes_ref, wv_ref, wb_ref, pvec_ref,
                                out_ref):
    # Stacked (8, hidden) param block: rows = [bv, g_v, b_v, bb, g_b, b_b, 0, 0].
    pv = pvec_ref[...].astype(jnp.float32)
    bv, gv, betav = pv[0:1, :], pv[1:2, :], pv[2:3, :]
    bb, gb, betab = pv[3:4, :], pv[4:5, :], pv[5:6, :]

    # --- visn path: big-K matmul on the MXU (bf16 in, f32 accumulation).
    x = jnp.dot(feats_ref[...], wv_ref[...], preferred_element_type=jnp.float32)
    x = _layernorm_f32(x + bv, gv, betav)

    # --- box path: K = pos_dim is tiny (4) -> unrolled broadcast-FMA on the
    # VPU; overlaps with the MXU work instead of wasting a padded MXU pass.
    boxes = boxes_ref[...].astype(jnp.float32)      # (tile, pos_dim), tiny
    wb = wb_ref[...].astype(jnp.float32)            # (pos_dim, hidden), tiny
    y = bb
    for k in range(boxes.shape[1]):                 # static, pos_dim iterations
        y = y + boxes[:, k:k + 1] * wb[k:k + 1, :]
    y = _layernorm_f32(y, gb, betab)

    out_ref[...] = ((x + y) * 0.5).astype(out_ref.dtype)


def _round_up(x, m):
    return ((x + m - 1) // m) * m


def _invariant_spec(shape):
    """Index-invariant block: DMA'd once, single-buffered (no pipelining needed)."""
    idx = lambda i: (0,) * len(shape)
    try:
        return pl.BlockSpec(shape, idx, pipeline_mode=pl.Buffered(1))
    except (TypeError, AttributeError):   # older jax without pipeline_mode
        return pl.BlockSpec(shape, idx)


def visual_feat_encoder(feats, boxes, params, *, tile_rows=512,
                        matmul_dtype=jnp.bfloat16,
                        vmem_budget_bytes=28 << 20):
    """feats: (B, N, feat_dim), boxes: (B, N, pos_dim) -> (B, N, hidden)."""
    B, N, feat_dim = feats.shape
    _, _, pos_dim = boxes.shape
    hidden = params["wv"].shape[1]
    rows = B * N
    out_dtype = feats.dtype

    feats2d = feats.reshape(rows, feat_dim)
    boxes2d = boxes.reshape(rows, pos_dim)

    # Feed the MXU bf16 (f32 accumulation happens in-kernel); LN stays f32.
    wv = params["wv"]
    if matmul_dtype is not None and feats2d.dtype == jnp.float32:
        feats2d = feats2d.astype(matmul_dtype)
        wv = wv.astype(matmul_dtype)

    # Row tile: large by default, but capped at ~rows/2 so the grid has >= 2
    # steps (v7x: both TensorCores get work), then clamped to the VMEM budget.
    two_core_cap = _round_up(max(pl.cdiv(rows, 2), 8), 8)
    tile = min(_round_up(max(tile_rows, 8), 8), two_core_cap)

    def _vmem_estimate(t):
        return (2 * t * feat_dim * feats2d.dtype.itemsize        # feats, 2 bufs
                + 2 * t * pos_dim * boxes2d.dtype.itemsize       # boxes, 2 bufs
                + 2 * t * hidden * jnp.dtype(out_dtype).itemsize  # out, 2 bufs
                + feat_dim * hidden * wv.dtype.itemsize           # Wv, 1 buf
                + (pos_dim + 8) * hidden * params["wb"].dtype.itemsize
                + 2 * t * hidden * 4)                             # f32 x, y temps

    while tile > 8 and _vmem_estimate(tile) > vmem_budget_bytes:
        tile = _round_up(tile // 2, 8)

    # Stack the six (1, hidden) vectors into one sublane-aligned (8, hidden).
    pdt = params["bv"].dtype
    pvec = jnp.concatenate(
        [params["bv"], params["gv"], params["betav"],
         params["bb"], params["gb"], params["betab"],
         jnp.zeros((2, hidden), pdt)], axis=0)

    grid = (pl.cdiv(rows, tile),)          # partial last block handled by Pallas
    row_spec = lambda d: pl.BlockSpec((tile, d), lambda i: (i, 0))

    out2d = pl.pallas_call(
        _visual_feat_encoder_kernel,
        out_shape=jax.ShapeDtypeStruct((rows, hidden), out_dtype),
        grid_spec=pltpu.PrefetchScalarGridSpec(
            num_scalar_prefetch=0,
            grid=grid,
            in_specs=[
                row_spec(feat_dim),                    # feats row tile
                row_spec(pos_dim),                     # boxes row tile
                _invariant_spec((feat_dim, hidden)),   # Wv (in, hidden), 1 buf
                _invariant_spec((pos_dim, hidden)),    # Wb (in, hidden), 1 buf
                _invariant_spec((8, hidden)),          # stacked bias / LN params
            ],
            out_specs=pl.BlockSpec((tile, hidden), lambda i: (i, 0)),
        ),
        compiler_params=pltpu.CompilerParams(
            dimension_semantics=("parallel",),   # independent row tiles
            vmem_limit_bytes=48 << 20),          # above v5e's 16 MiB default,
                                                 # below v7x's 64 MiB physical
    )(feats2d, boxes2d, wv, params["wb"], pvec)

    return out2d.reshape(B, N, hidden)


def init_params(key, feat_dim, pos_dim, hidden, dtype=jnp.float32):
    k1, k2, k3, k4 = jax.random.split(key, 4)
    # nn.Linear stores weight as (out, in); we store (in, out) so kernel does x @ W.
    return {
        "wv": jax.random.normal(k1, (feat_dim, hidden), dtype) * 0.02,
        "bv": jax.random.normal(k2, (1, hidden), dtype) * 0.02,
        "wb": jax.random.normal(k3, (pos_dim, hidden), dtype) * 0.02,
        "bb": jax.random.normal(k4, (1, hidden), dtype) * 0.02,
        # LayerNorm params initialized as PyTorch does (ones / zeros).
        "gv": jnp.ones((1, hidden), dtype),
        "betav": jnp.zeros((1, hidden), dtype),
        "gb": jnp.ones((1, hidden), dtype),
        "betab": jnp.zeros((1, hidden), dtype),
    }


def _reference(feats, boxes, p, matmul_dtype=None):
    def ln(x, g, b, eps=1e-12):
        m = jnp.mean(x, axis=-1, keepdims=True)
        v = jnp.mean((x - m) ** 2, axis=-1, keepdims=True)
        return (x - m) / jnp.sqrt(v + eps) * g + b
    f, wv = feats, p["wv"]
    if matmul_dtype is not None:       # mirror the kernel's bf16 MXU stream
        f, wv = f.astype(matmul_dtype), wv.astype(matmul_dtype)
    x = ln(jnp.dot(f, wv, preferred_element_type=jnp.float32) + p["bv"],
           p["gv"], p["betav"])
    y = ln(boxes @ p["wb"] + p["bb"], p["gb"], p["betab"])
    return (x + y) / 2


if __name__ == "__main__":
    # TODO(synk): dropout from the PyTorch module is unused in forward; omitted.
    B, N = 2, 9            # batch, number of visual regions (rows=18 -> partial block)
    feat_dim = 128         # cfg.visual_feat_dim (kept small but lane-aligned)
    pos_dim = 4            # cfg.visual_pos_dim
    hidden = 128           # cfg.hidden_size (lane-dense output)

    key = jax.random.PRNGKey(0)
    kf, kb, kp = jax.random.split(key, 3)
    feats = jax.random.normal(kf, (B, N, feat_dim), jnp.float32)
    boxes = jax.random.normal(kb, (B, N, pos_dim), jnp.float32)
    params = init_params(kp, feat_dim, pos_dim, hidden)

    ref_bf16 = _reference(feats, boxes, params, matmul_dtype=jnp.bfloat16)
    ref_f32 = _reference(feats, boxes, params)

    # Default path: bf16 MXU stream, >= 2 grid steps, partial last block masked.
    out = jax.block_until_ready(visual_feat_encoder(feats, boxes, params))
    assert out.shape == (B, N, hidden)
    assert jnp.allclose(out, ref_bf16, atol=2e-3, rtol=2e-3), "mismatch (bf16 ref)"
    assert jnp.allclose(out, ref_f32, atol=5e-2, rtol=5e-2), "mismatch (f32 ref, loose)"

    # Small-tile grid: more steps, still a masked tail block.
    out2 = jax.block_until_ready(
        visual_feat_encoder(feats, boxes, params, tile_rows=8))
    assert jnp.allclose(out2, ref_bf16, atol=2e-3, rtol=2e-3), "mismatch (tiled grid)"

    # Pure-f32 path (no bf16 cast) against the f32 reference.
    out3 = jax.block_until_ready(
        visual_feat_encoder(feats, boxes, params, matmul_dtype=None))
    assert jnp.allclose(out3, ref_f32, atol=1e-4, rtol=1e-4), "mismatch (f32 path)"

    print("KERNEL_OK")
</pallas_src>

<mosaic_0001>
module attributes {stable_mosaic.version = 11 : i64} {
  func.func @_visual_feat_encoder_kernel(%arg0: i32, %arg1: memref<16x128xbf16, #tpu.memory_space<vmem>>, %arg2: memref<16x4xf32, #tpu.memory_space<vmem>>, %arg3: memref<128x128xbf16, #tpu.memory_space<vmem>>, %arg4: memref<4x128xf32, #tpu.memory_space<vmem>>, %arg5: memref<8x128xf32, #tpu.memory_space<vmem>>, %arg6: memref<16x128xf32, #tpu.memory_space<vmem>>) attributes {dimension_semantics = [#tpu.dimension_semantics<parallel>], iteration_bounds = array<i64: 2>, scalar_prefetch = 0 : i64, scratch_operands = 0 : i64, tpu.core_type = #tpu.core_type<tc>, window_params = [{transform_indices = @transform_0, window_bounds = array<i64: 16, 128>}, {transform_indices = @transform_1, window_bounds = array<i64: 16, 4>}, {pipeline_mode = #tpu.pipeline_mode<synchronous>, transform_indices = @transform_2, window_bounds = array<i64: 128, 128>}, {pipeline_mode = #tpu.pipeline_mode<synchronous>, transform_indices = @transform_3, window_bounds = array<i64: 4, 128>}, {pipeline_mode = #tpu.pipeline_mode<synchronous>, transform_indices = @transform_4, window_bounds = array<i64: 8, 128>}, {transform_indices = @transform_5, window_bounds = array<i64: 16, 128>}]} {
    %c0 = arith.constant 0 : index
    %c0_0 = arith.constant 0 : index
    %0 = vector.load %arg5[%c0, %c0_0] : memref<8x128xf32, #tpu.memory_space<vmem>>, vector<8x128xf32>
    %1 = vector.extract_strided_slice %0 {offsets = [0, 0], sizes = [1, 128], strides = [1, 1]} : vector<8x128xf32> to vector<1x128xf32>
    %2 = vector.extract_strided_slice %0 {offsets = [1, 0], sizes = [1, 128], strides = [1, 1]} : vector<8x128xf32> to vector<1x128xf32>
    %3 = vector.extract_strided_slice %0 {offsets = [2, 0], sizes = [1, 128], strides = [1, 1]} : vector<8x128xf32> to vector<1x128xf32>
    %4 = vector.extract_strided_slice %0 {offsets = [3, 0], sizes = [1, 128], strides = [1, 1]} : vector<8x128xf32> to vector<1x128xf32>
    %5 = vector.extract_strided_slice %0 {offsets = [4, 0], sizes = [1, 128], strides = [1, 1]} : vector<8x128xf32> to vector<1x128xf32>
    %6 = vector.extract_strided_slice %0 {offsets = [5, 0], sizes = [1, 128], strides = [1, 1]} : vector<8x128xf32> to vector<1x128xf32>
    %c0_1 = arith.constant 0 : index
    %c0_2 = arith.constant 0 : index
    %7 = vector.load %arg1[%c0_1, %c0_2] : memref<16x128xbf16, #tpu.memory_space<vmem>>, vector<16x128xbf16>
    %c0_3 = arith.constant 0 : index
    %c0_4 = arith.constant 0 : index
    %8 = vector.load %arg3[%c0_3, %c0_4] : memref<128x128xbf16, #tpu.memory_space<vmem>>, vector<128x128xbf16>
    %cst = arith.constant dense<0.000000e+00> : vector<16x128xf32>
    %9 = tpu.matmul %7, %8, %cst {dimension_numbers = #tpu.dot_dimension_numbers<[1], [0], [0], [1], [0, 0, 1, 1], [], []>} : vector<16x128xbf16>, vector<128x128xbf16>, vector<16x128xf32> -> vector<16x128xf32>
    %10 = vector.broadcast %1 : vector<1x128xf32> to vector<16x128xf32>
    %11 = arith.addf %9, %10 : vector<16x128xf32>
    %cst_5 = arith.constant dense<0.000000e+00> : vector<16xf32>
    %12 = vector.multi_reduction <add>, %11, %cst_5 [1] : vector<16x128xf32> to vector<16xf32>
    %13 = vector.shape_cast %12 : vector<16xf32> to vector<16x1xf32>
    %cst_6 = arith.constant 1.280000e+02 : f32
    %14 = vector.broadcast %cst_6 : f32 to vector<16x1xf32>
    %15 = arith.divf %13, %14 : vector<16x1xf32>
    %16 = vector.broadcast %15 : vector<16x1xf32> to vector<16x128xf32>
    %17 = arith.subf %11, %16 : vector<16x128xf32>
    %18 = arith.mulf %17, %17 : vector<16x128xf32>
    %cst_7 = arith.constant dense<0.000000e+00> : vector<16xf32>
    %19 = vector.multi_reduction <add>, %18, %cst_7 [1] : vector<16x128xf32> to vector<16xf32>
    %20 = vector.shape_cast %19 : vector<16xf32> to vector<16x1xf32>
    %cst_8 = arith.constant 1.280000e+02 : f32
    %21 = vector.broadcast %cst_8 : f32 to vector<16x1xf32>
    %22 = arith.divf %20, %21 : vector<16x1xf32>
    %cst_9 = arith.constant 9.99999996E-13 : f32
    %23 = vector.broadcast %cst_9 : f32 to vector<16x1xf32>
    %24 = arith.addf %22, %23 : vector<16x1xf32>
    %25 = math.rsqrt %24 : vector<16x1xf32>
    %26 = vector.broadcast %25 : vector<16x1xf32> to vector<16x128xf32>
    %27 = arith.mulf %17, %26 : vector<16x128xf32>
    %28 = vector.broadcast %2 : vector<1x128xf32> to vector<16x128xf32>
    %29 = arith.mulf %27, %28 : vector<16x128xf32>
    %30 = vector.broadcast %3 : vector<1x128xf32> to vector<16x128xf32>
    %31 = arith.addf %29, %30 : vector<16x128xf32>
    %c0_10 = arith.constant 0 : index
    %c0_11 = arith.constant 0 : index
    %32 = vector.load %arg2[%c0_10, %c0_11] : memref<16x4xf32, #tpu.memory_space<vmem>>, vector<16x4xf32>
    %c0_12 = arith.constant 0 : index
    %c0_13 = arith.constant 0 : index
    %33 = vector.load %arg4[%c0_12, %c0_13] : memref<4x128xf32, #tpu.memory_space<vmem>>, vector<4x128xf32>
    %34 = vector.extract_strided_slice %32 {offsets = [0, 0], sizes = [16, 1], strides = [1, 1]} : vector<16x4xf32> to vector<16x1xf32>
    %35 = vector.extract_strided_slice %33 {offsets = [0, 0], sizes = [1, 128], strides = [1, 1]} : vector<4x128xf32> to vector<1x128xf32>
    %36 = vector.broadcast %34 : vector<16x1xf32> to vector<16x128xf32>
    %37 = vector.broadcast %35 : vector<1x128xf32> to vector<16x128xf32>
    %38 = arith.mulf %36, %37 : vector<16x128xf32>
    %39 = vector.broadcast %4 : vector<1x128xf32> to vector<16x128xf32>
    %40 = arith.addf %39, %38 : vector<16x128xf32>
    %41 = vector.extract_strided_slice %32 {offsets = [0, 1], sizes = [16, 1], strides = [1, 1]} : vector<16x4xf32> to vector<16x1xf32>
    %42 = vector.extract_strided_slice %33 {offsets = [1, 0], sizes = [1, 128], strides = [1, 1]} : vector<4x128xf32> to vector<1x128xf32>
    %43 = vector.broadcast %41 : vector<16x1xf32> to vector<16x128xf32>
    %44 = vector.broadcast %42 : vector<1x128xf32> to vector<16x128xf32>
    %45 = arith.mulf %43, %44 : vector<16x128xf32>
    %46 = arith.addf %40, %45 : vector<16x128xf32>
    %47 = vector.extract_strided_slice %32 {offsets = [0, 2], sizes = [16, 1], strides = [1, 1]} : vector<16x4xf32> to vector<16x1xf32>
    %48 = vector.extract_strided_slice %33 {offsets = [2, 0], sizes = [1, 128], strides = [1, 1]} : vector<4x128xf32> to vector<1x128xf32>
    %49 = vector.broadcast %47 : vector<16x1xf32> to vector<16x128xf32>
    %50 = vector.broadcast %48 : vector<1x128xf32> to vector<16x128xf32>
    %51 = arith.mulf %49, %50 : vector<16x128xf32>
    %52 = arith.addf %46, %51 : vector<16x128xf32>
    %53 = vector.extract_strided_slice %32 {offsets = [0, 3], sizes = [16, 1], strides = [1, 1]} : vector<16x4xf32> to vector<16x1xf32>
    %54 = vector.extract_strided_slice %33 {offsets = [3, 0], sizes = [1, 128], strides = [1, 1]} : vector<4x128xf32> to vector<1x128xf32>
    %55 = vector.broadcast %53 : vector<16x1xf32> to vector<16x128xf32>
    %56 = vector.broadcast %54 : vector<1x128xf32> to vector<16x128xf32>
    %57 = arith.mulf %55, %56 : vector<16x128xf32>
    %58 = arith.addf %52, %57 : vector<16x128xf32>
    %cst_14 = arith.constant dense<0.000000e+00> : vector<16xf32>
    %59 = vector.multi_reduction <add>, %58, %cst_14 [1] : vector<16x128xf32> to vector<16xf32>
    %60 = vector.shape_cast %59 : vector<16xf32> to vector<16x1xf32>
    %cst_15 = arith.constant 1.280000e+02 : f32
    %61 = vector.broadcast %cst_15 : f32 to vector<16x1xf32>
    %62 = arith.divf %60, %61 : vector<16x1xf32>
    %63 = vector.broadcast %62 : vector<16x1xf32> to vector<16x128xf32>
    %64 = arith.subf %58, %63 : vector<16x128xf32>
    %65 = arith.mulf %64, %64 : vector<16x128xf32>
    %cst_16 = arith.constant dense<0.000000e+00> : vector<16xf32>
    %66 = vector.multi_reduction <add>, %65, %cst_16 [1] : vector<16x128xf32> to vector<16xf32>
    %67 = vector.shape_cast %66 : vector<16xf32> to vector<16x1xf32>
    %cst_17 = arith.constant 1.280000e+02 : f32
    %68 = vector.broadcast %cst_17 : f32 to vector<16x1xf32>
    %69 = arith.divf %67, %68 : vector<16x1xf32>
    %cst_18 = arith.constant 9.99999996E-13 : f32
    %70 = vector.broadcast %cst_18 : f32 to vector<16x1xf32>
    %71 = arith.addf %69, %70 : vector<16x1xf32>
    %72 = math.rsqrt %71 : vector<16x1xf32>
    %73 = vector.broadcast %72 : vector<16x1xf32> to vector<16x128xf32>
    %74 = arith.mulf %64, %73 : vector<16x128xf32>
    %75 = vector.broadcast %5 : vector<1x128xf32> to vector<16x128xf32>
    %76 = arith.mulf %74, %75 : vector<16x128xf32>
    %77 = vector.broadcast %6 : vector<1x128xf32> to vector<16x128xf32>
    %78 = arith.addf %76, %77 : vector<16x128xf32>
    %79 = arith.addf %31, %78 : vector<16x128xf32>
    %cst_19 = arith.constant 5.000000e-01 : f32
    %80 = vector.broadcast %cst_19 : f32 to vector<16x128xf32>
    %81 = arith.mulf %79, %80 : vector<16x128xf32>
    %c0_20 = arith.constant 0 : index
    %c0_21 = arith.constant 0 : index
    %82 = vector.load %arg6[%c0_20, %c0_21] : memref<16x128xf32, #tpu.memory_space<vmem>>, vector<16x128xf32>
    tpu.vector_store %arg6[%c0_20, %c0_21], %81 {strides = array<i32>} : memref<16x128xf32, #tpu.memory_space<vmem>>, vector<16x128xf32>,
    return
  }
  func.func @transform_0(%arg0: i32) -> (i32, i32) {
    %c0_i32 = arith.constant 0 : i32
    %c0_i32_0 = arith.constant 0 : i32
    return %arg0, %c0_i32 : i32, i32
  }
  func.func @transform_1(%arg0: i32) -> (i32, i32) {
    %c0_i32 = arith.constant 0 : i32
    %c0_i32_0 = arith.constant 0 : i32
    return %arg0, %c0_i32 : i32, i32
  }
  func.func @transform_2(%arg0: i32) -> (i32, i32) {
    %c0_i32 = arith.constant 0 : i32
    %c0_i32_0 = arith.constant 0 : i32
    %c0_i32_1 = arith.constant 0 : i32
    return %c0_i32, %c0_i32_0 : i32, i32
  }
  func.func @transform_3(%arg0: i32) -> (i32, i32) {
    %c0_i32 = arith.constant 0 : i32
    %c0_i32_0 = arith.constant 0 : i32
    %c0_i32_1 = arith.constant 0 : i32
    return %c0_i32, %c0_i32_0 : i32, i32
  }
  func.func @transform_4(%arg0: i32) -> (i32, i32) {
    %c0_i32 = arith.constant 0 : i32
    %c0_i32_0 = arith.constant 0 : i32
    %c0_i32_1 = arith.constant 0 : i32
    return %c0_i32, %c0_i32_0 : i32, i32
  }
  func.func @transform_5(%arg0: i32) -> (i32, i32) {
    %c0_i32 = arith.constant 0 : i32
    %c0_i32_0 = arith.constant 0 : i32
    return %arg0, %c0_i32 : i32, i32
  }
}

</mosaic_0001>

<bundles_post_ra>
// kernel: tpu_custom_call.1
= control target key start
LH: loop header
LB: loop body
LE: loop exit
PB: predicated region body
PF: predicated region fallthrough
CT: control target
= control target key end

     0   :  { %10 = vsyncpa [#allocation3], 0  ;;  %s1129_s0 = inlined_call_operand.vmem [shape: bf16[18,128], index: 0, kind: input, shape index: {}]   ;;  %s1130_s1 = inlined_call_operand.vmem [shape: f32[18,4], index: 1, kind: input, shape index: {}]   ;;  %s1131_s2 = inlined_call_operand.hbm [shape: bf16[128,128], index: 2, kind: input, shape index: {}]   ;;  %s1132_s3 = inlined_call_operand.vmem [shape: f32[4,128], index: 3, kind: input, shape index: {}]   ;;  %s1133_s4 = inlined_call_operand.vmem [shape: f32[8,128], index: 4, kind: input, shape index: {}]   ;;  %s1134_s5 = inlined_call_operand.hbm [shape: f32[18,128], index: 5, kind: output, shape index: {}]  }
   0x1   :  { %11 = vsyncpa [#allocation4], 0 }
   0x2   :  { %13 = vsyncpa [#allocation4 + $0x1], 0  ;;  %s955_s18 = smov 0   ;;  %s957_s19 = smov 0  }
   0x3   :  { %s959_s20 = smov 0   ;;  %s961_s21 = smov 0  }
   0x4 LB: > { %s976_s22 = sadd.s32 4294967295, %s911_s21   ;;  %s680_s23 = sadd.s32 4294967294, %s911_s21   ;;  %s911_s21 = sphi %s961_s21, %s1142_s21   ;;  %s907_s20 = sphi %s959_s20, %s1141_s20   ;;  %s903_s19 = sphi %s957_s19, %s1140_s19   ;;  %s899_s18 = sphi %s955_s18, %s1139_s18  }
   0x5   : > { %s980_s24 = sadd.s32 1, %s911_s21   ;;  %s141_s25 = sadd.s32 1, %s907_s20 }
   0x6   : > { %s138_s26 = ssub.s32 %s911_s21, %s980_s24  ;;  %p151_p0 = scmp.ne.s32.totalorder %s907_s20, %s903_s19 }
   0x7   : > { %p139_p1 = scmp.eq.s32.totalorder %s138_s26, 0  ;;  %p152_p2 = scmp.eq.s32.totalorder %s976_s22, 1 }
   0x8   : > { %p157_p3 = scmp.ne.s32.totalorder %s903_s19, %s899_s18  ;;  %p158_p4 = scmp.eq.s32.totalorder %s680_s23, 1 }
   0x9   : > { %s991_s27 = scalar_select %p139_p1, %s907_s20, %s141_s25  }
   0xa   : > { %p993_p5 = por %p152_p2, %p151_p0  ;;  %p997_p6 = por %p158_p4, %p157_p3 }
   0xb   : > { %p681_p7 = scmp.ge.s32.totalorder %s911_s21, 1  ;;  %p165_p8 = scmp.lt.s32.totalorder %s911_s21, 3 }
   0xc   : > { %s1136_s29 = scalar_select %p997_p6, 1, 0 }
   0xd   : > { %p752_p9 = scmp.eq.s32.totalorder %s976_s22, 0  ;;  %p1004_p10 = pnand %p681_p7, %p165_p8 }
   0xe   : > { %s913_s6 = smov [#allocation2]  }
   0xf   : > { %s177_s7 = sshll.u32 %s913_s6, 4  ;;  %p744_p11 = pneg %p1004_p10  ;;  %s178_s7 = int_to_ptr.vmem [resolvable:$true] %s177_s7 }
  0x10   : > { %s832_s8 = scalar_lea.vmem %s178_s7, 1024  ;;  %p840_p3 = scmp.lt.s32.totalorder %s178_s7, %s178_s7 }
  0x11   : > { %p745_p12 = pnand %p752_p9, %p744_p11  ;;  %p833_p0 = scmp.ne.s32.totalorder %s178_s7, %s832_s8 }
  0x12   : > { %p841_p4 = scmp.lt.s32.totalorder %s832_s8, %s832_s8 }
  0x13   : > { %p823_p13 = pneg %p745_p12 }
  0x14   : > { %p842_p6 = por %p841_p4, %p840_p3 }
  0x15   : > { %p835_p1 = pnand %p833_p0, %p823_p13 }
  0x17   : > { %p836_p2 = pneg %p835_p1 }
  0x19   : > { %p843_p7 = pnand %p842_p6, %p836_p2 }
  0x1b   : > { %846 = shalt.err (!%p843_p7)
}
  0x1c   : > { %s914_s9 = smov 64   ;;  %s915_s10 = smov 4  }
  0x1d   : > { %747 = dma.hbm_to_vmem [thread:$0]  (!%p745_p12), %s1131_s2, 1024, %s178_s7, [#allocation3], %s914_s9, %s914_s9, %s915_s10  }
  0x1e   : > { %233 = sbr.rel (%p1004_p10) target bundleno = 611 (0x263), region = 40 }
  0x23   : > { %890 = dma.done.wait (%p752_p9), [#allocation3], 1024  }
  0x24   : > { %892 = vsyncadd (%p752_p9), [#allocation3], 4294966272  ;;  %s1022_s13 = sshll.u32 %s976_s22, 1  ;;  %v916_v0 = vmov 0.0   ;;  %vm917_vm0 = vmmov 0   ;;  %v918_v1 = vmov 1   ;;  %v327_v16 = vlaneseq }
  0x25   : > { %719 = vmatprep.subr.bf16.mxu0 %v916_v0  ;;  %735 = vmatprep.mubr.msk.bf16.mxu0 %vm917_vm0, %v916_v0  ;;  %v919_v2 = vmov 0   ;;  %p279_p6 = scmp.lt.s32.totalorder %s1022_s13, 2  ;;  %v804_v3 = vld [vmem:[#allocation2 + $0x38] sm:$0xff]   ;;  %v805_v4 = vld [vmem:[#allocation2 + $0x30] sm:$0xff]   ;;  %v806_v5 = vld [vmem:[#allocation2 + $0x28] sm:$0xff]   ;;  %v920_v11 = vmov 2  }
  0x26   : > { %799 = vset.pattern.permute.xlu1 %v918_v1  ;;  %798 = vset.pattern.permute.xlu0 %v919_v2  ;;  %v807_v7 = vld [vmem:[#allocation2 + $0x20] sm:$0xff]   ;;  %v808_v9 = vld [vmem:[#allocation2 + $0x18] sm:$0xff]   ;;  %v809_v10 = vld [vmem:[#allocation2 + $0x10] sm:$0xff]   ;;  %v921_v13 = vmov 3   ;;  %v1035_v17 = vshrl.u32 %v327_v16, 7  ;;  %s271_s11 = sand.u32 1, %s903_s19  }
  0x27   : > { %s280_s14 = scalar_select %p279_p6, %s1022_s13, 2  ;;  %720 = vmatpush3.bf16.msra.mxu0 %v804_v3  ;;  %v810_v12 = vld [vmem:[#allocation2 + $0x8] sm:$0xff]   ;;  %v811_v14 = vld [vmem:[#allocation2] sm:$0xff]  }
  0x28   : > { %721 = vmatprep.subr.bf16.mxu0 %v916_v0  ;;  %v329_v19 = vsub.s32 0, %v1035_v17  ;;  %v463_v20 = vld [vmem:[%s1132_s3] sm:$0xf]  ;;  %v451_v22 = vsub.s32 1, %v1035_v17  ;;  %v482_v24 = vsub.s32 3, %v1035_v17  ;;  %v457_v30 = vsub.s32 2, %v1035_v17 }
  0x29   : > { %s690_s15 = sshll.u32 %s280_s14, 3  ;;  %s688_s16 = sshll.u32 %s280_s14, 2  ;;  %v1046_v25 = vld [vmem:[%s1133_s4] sm:$0xff] }
  0x2a   : > { %s296_s25 = scalar_lea.vmem %s1130_s1, %s690_s15  ;;  %s1032_s6 = scalar_lea.vmem %s1129_s0, %s688_s16  ;;  %v477_v23 = vrot.slane %v463_v20, %v329_v19  ;;  %v497_v27 = vrot.slane %v463_v20, %v451_v22  ;;  %v483_v29 = vrot.slane %v1046_v25, %v482_v24  ;;  %v513_v36 = vrot.slane %v463_v20, %v457_v30 }
  0x2b   : > { %722 = vmatpush3.bf16.msra.mxu0 %v805_v4  ;;  %v461_v6 = vld [vmem:[%s296_s25] sm:$0xff]  ;;  %v462_v8 = vld [vmem:[%s296_s25 + $0x8] sm:$0xff]  ;;  %v529_v42 = vrot.slane %v463_v20, %v482_v24  ;;  %v330_v43 = vrot.slane %v1046_v25, %v329_v19  ;;  %s686_s12 = sshll.u32 %s271_s11, 4  ;;  %s1070_s15 = scalar_lea.sflag [#allocation4], %s271_s11 }
  0x2c   : > { %723 = vmatprep.subr.bf16.mxu0 %v916_v0  ;;  %487 = vperm.xlu1 %799, %v461_v6   ;;  %v812_v15 = vld [vmem:[%s1032_s6] sm:$0xff]   ;;  %s273_s14 = scalar_lea.vmem [#allocation5], %s686_s12  ;;  %s583_s16 = ssub.s32 (%p993_p5), 3, %s1022_s13 }
  0x2d   : > { %466 = vperm.xlu0 %798, %v461_v6   ;;  %p584_p8 = scmp.lt.s32.totalorder (%p993_p5), %s583_s16, 2 }
  0x2f   : > { %724 = vmatpush3.bf16.msra.mxu0 %v806_v5 }
  0x30   : > { %725 = vmatprep.subr.bf16.mxu0 %v916_v0  ;;  %491 = vperm.xlu1 %799, %v462_v8  }
  0x31   : > { %471 = vperm.xlu0 %798, %v462_v8  }
  0x33   : > { %726 = vmatpush3.bf16.msra.mxu0 %v807_v7 }
  0x34   : > { %727 = vmatprep.subr.bf16.mxu0 %v916_v0  ;;  %801 = vset.pattern.permute.xlu1 %v920_v11 }
  0x35   : > { %800 = vset.pattern.permute.xlu0 %v920_v11  ;;  %507 = vperm.xlu1 %801, %v462_v8  }
  0x36   : > { %503 = vperm.xlu0 %800, %v461_v6  }
  0x37   : > { %728 = vmatpush3.bf16.msra.mxu0 %v808_v9 }
  0x38   : > { %729 = vmatprep.subr.bf16.mxu0 %v916_v0 }
  0x39   : > { %802 = vset.pattern.permute.xlu1 %v921_v13 }
  0x3a   : > { %803 = vset.pattern.permute.xlu0 %v921_v13  ;;  %519 = vperm.xlu1 %802, %v461_v6  }
  0x3b   : > { %730 = vmatpush3.bf16.msra.mxu0 %v809_v10  ;;  %523 = vperm.xlu0 %803, %v462_v8  }
  0x3c   : > { %731 = vmatprep.subr.bf16.mxu0 %v916_v0 }
  0x3f   : > { %732 = vmatpush3.bf16.msra.mxu0 %v810_v12 }
  0x40   : > { %733 = vmatprep.subr.bf16.mxu0 %v916_v0 }
  0x43   : > { %734 = vmatpush3.bf16.msra.mxu0 %v811_v14 }
  0x46   : > { %736 = vmatmul.mubr.bf16.vlgmr.msra.gmra.mxu0 %v812_v15 }
  0xa7   : > { %v488_v18 = vpop.permute.xlu1 %487 }
  0xa8   : > { %v467_v21 = vpop.permute.xlu0 %466  ;;  %v498_v34 = vmul.f32 %v497_v27, %v488_v18 }
  0xa9   : > { %v478_v28 = vmul.f32 %v477_v23, %v467_v21 }
  0xab   : > { %v492_v26 = vpop.permute.xlu1 %491  ;;  %v484_v35 = vadd.f32 %v483_v29, %v478_v28 }
  0xac   : > { %v472_v31 = vpop.permute.xlu0 %471  ;;  %v499_v37 = vmul.f32 %v497_v27, %v492_v26  ;;  %v452_v27 = vrot.slane %v1046_v25, %v451_v22 }
  0xad   : > { %v479_v32 = vmul.f32 %v477_v23, %v472_v31  ;;  %v500_v40 = vadd.f32 %v498_v34, %v484_v35  ;;  %v458_v31 = vrot.slane %v1046_v25, %v457_v30 }
  0xaf   : > { %v485_v38 = vadd.f32 %v483_v29, %v479_v32  ;;  %v558_v29 = vsub.s32 4, %v1035_v17 }
  0xb0   : > { %v508_v33 = vpop.permute.xlu1 %507 }
  0xb1   : > { %v504_v39 = vpop.permute.xlu0 %503  ;;  %v501_v45 = vadd.f32 %v499_v37, %v485_v38  ;;  %v515_v47 = vmul.f32 %v513_v36, %v508_v33  ;;  %v564_v33 = vsub.s32 5, %v1035_v17 }
  0xb2   : > { %v514_v41 = vmul.f32 %v513_v36, %v504_v39  ;;  %v559_v36 = vrot.slane %v1046_v25, %v558_v29 }
  0xb3   : > { %v517_v54 = vadd.f32 %v515_v47, %v501_v45  ;;  %v565_v22 = vrot.slane %v1046_v25, %v564_v33 }
  0xb4   : > { %v516_v48 = vadd.f32 %v514_v41, %v500_v40 }
  0xb5   : > { %v520_v44 = vpop.permute.xlu1 %519 }
  0xb6   : > { %v530_v49 = vmul.f32 %v529_v42, %v520_v44  ;;  %v524_v51 = vpop.permute.xlu0 %523 }
  0xb7   : > { %v531_v55 = vmul.f32 %v529_v42, %v524_v51 }
  0xb8   : > { %v532_v57 = vadd.f32 %v530_v49, %v516_v48 }
  0xb9   : > { %v533_v59 = vadd.f32 %v531_v55, %v517_v54 }
 0x106   : > { %v419_v46 = vpop.f32.mrf.mxu0 }
 0x107   : > { %v420_v50 = vadd.f32 %v419_v46, %v330_v43 }
 0x108   : > { %v737_v52 = vpop.f32.mrf.mxu0 }
 0x109   : > { %426 = vadd.xlane.f32.xlu1 %v420_v50 }
 0x10a   : > { %v422_v53 = vpop.f32.mrf.mxu0 }
 0x10b   : > { %v423_v56 = vadd.f32 %v422_v53, %v330_v43 }
 0x10c   : > { %v738_v58 = vpop.f32.mrf.mxu0 }
 0x10d   : > { %428 = vadd.xlane.f32.xlu0 %v423_v56  ;;  %534 = vadd.xlane.f32.xlu1 %v532_v57 }
 0x111   : > { %536 = vadd.xlane.f32.xlu0 %v533_v59 }
 0x192   : > { %v427_v60 = vpop.xlane.xlu1 %426 }
 0x193   : > { %v431_v61 = vmul.f32 0.0078125, %v427_v60 }
 0x195   : > { %v433_v62 = vsub.f32 %v420_v50, %v431_v61 }
 0x196   : > { %v429_v63 = vpop.xlane.xlu0 %428  ;;  %v535_v0 = vpop.xlane.xlu1 %534 }
 0x197   : > { %v432_v1 = vmul.f32 0.0078125, %v429_v63  ;;  %v538_v2 = vmul.f32 0.0078125, %v535_v0  ;;  %v435_v3 = vmul.f32 %v433_v62, %v433_v62 }
 0x199   : > { %v434_v4 = vsub.f32 %v423_v56, %v432_v1  ;;  %v540_v5 = vsub.f32 %v532_v57, %v538_v2  ;;  %437 = vadd.xlane.f32.xlu1 %v435_v3 }
 0x19a   : > { %v537_v6 = vpop.xlane.xlu0 %536 }
 0x19b   : > { %v539_v7 = vmul.f32 0.0078125, %v537_v6  ;;  %v436_v8 = vmul.f32 %v434_v4, %v434_v4  ;;  %v542_v9 = vmul.f32 %v540_v5, %v540_v5 }
 0x19d   : > { %v541_v10 = vsub.f32 %v533_v59, %v539_v7  ;;  %439 = vadd.xlane.f32.xlu0 %v436_v8  ;;  %544 = vadd.xlane.f32.xlu1 %v542_v9 }
 0x19f   : > { %v543_v11 = vmul.f32 %v541_v10, %v541_v10 }
 0x1a1   : > { %546 = vadd.xlane.f32.xlu0 %v543_v11 }
 0x222   : > { %v438_v12 = vpop.xlane.xlu1 %437 }
 0x223   : > { %v441_v13 = vmul.f32 0.0078125, %v438_v12 }
 0x225   : > { %v443_v14 = vadd.f32 1e-12, %v441_v13 }
 0x226   : > { %v440_v15 = vpop.xlane.xlu0 %439  ;;  %v545_v16 = vpop.xlane.xlu1 %544 }
 0x227   : > { %813 = vrsqrt.f32 %v443_v14  ;;  %v442_v18 = vmul.f32 0.0078125, %v440_v15  ;;  %v548_v19 = vmul.f32 0.0078125, %v545_v16 }
 0x229   : > { %v444_v20 = vadd.f32 1e-12, %v442_v18  ;;  %v550_v21 = vadd.f32 1e-12, %v548_v19 }
 0x22a   : > { %v547_v23 = vpop.xlane.xlu0 %546 }
 0x22b   : > { %815 = vrsqrt.f32 %v444_v20  ;;  %v549_v24 = vmul.f32 0.0078125, %v547_v23 }
 0x22c   : > { %817 = vrsqrt.f32 %v550_v21 }
 0x22d   : > { %v551_v26 = vadd.f32 1e-12, %v549_v24 }
 0x22f   : > { %819 = vrsqrt.f32 %v551_v26 }
 0x234   : > { %v814_v28 = vpop.eup %813 }
 0x235   : > { %v447_v32 = vmul.f32 %v814_v28, %v433_v62 }
 0x237   : > { %v453_v34 = vmul.f32 %v452_v27, %v447_v32 }
 0x238   : > { %v816_v35 = vpop.eup %815 }
 0x239   : > { %v818_v37 = vpop.eup %817  ;;  %v459_v38 = vadd.f32 %v458_v31, %v453_v34  ;;  %v448_v39 = vmul.f32 %v816_v35, %v434_v4 }
 0x23a   : > { %v554_v40 = vmul.f32 %v818_v37, %v540_v5 }
 0x23b   : > { %v454_v41 = vmul.f32 %v452_v27, %v448_v39 }
 0x23c   : > { %v820_v42 = vpop.eup %819  ;;  %v560_v43 = vmul.f32 %v559_v36, %v554_v40 }
 0x23d   : > { %v460_v44 = vadd.f32 %v458_v31, %v454_v41  ;;  %v555_v30 = vmul.f32 %v820_v42, %v541_v10 }
 0x23e   : > { %v566_v45 = vadd.f32 %v565_v22, %v560_v43 }
 0x23f   : > { %v561_v17 = vmul.f32 %v559_v36, %v555_v30 }
 0x240   : > { %v568_v46 = vadd.f32 %v566_v45, %v459_v38 }
 0x241   : > { %v567_v47 = vadd.f32 %v565_v22, %v561_v17 }
 0x242   : > { %v570_v48 = vmul.f32 0.5, %v568_v46 }
 0x243   : > { %v569_v49 = vadd.f32 %v567_v47, %v460_v44  ;;  %581 = sbr.rel (!%p993_p5) target bundleno = 611 (0x263), region = 48 }
 0x244   : > { %572 = vst [vmem:[%s273_s14] sm:$0xff] %v570_v48 }
 0x245   : > { %v571_v50 = vmul.f32 0.5, %v569_v49 }
 0x247   : > { %573 = vst [vmem:[%s273_s14 + $0x8] sm:$0xff] %v571_v50 }
 0x248   : > { %s1144_s16 = smov (!%p584_p8, %s583_s16), 2 }
 0x249   : > { %s1075_s17 = sshll.u32 %s1144_s16, 7 }
 0x24a   : > { %s588_s23 = ssub.s32 256, %s1075_s17 }
 0x24b   : > { %589 = vsyncadd %s1070_s15, %s588_s23  ;;  %p703_p9 = scmp.ne.s32.totalorder %s1075_s17, 0  ;;  %s709_s25 = sshll.u32 %s976_s22, 8 }
 0x24c   : > { %s1084_s28 = scalar_lea.hbm %s1134_s5, %s709_s25  ;;  %s594_s6 = sshll.u32 %s273_s14, 4  ;;  %s1086_s6 = int_to_ptr.vmem [resolvable:$true] %s594_s6 }
 0x24d   : > { %s847_s13 = scalar_lea.vmem %s1086_s6, %s1075_s17  ;;  %s922_s7 = smov [#allocation5]  }
 0x24e   : > { %p848_p5 = scmp.ne.s32.totalorder %s1086_s6, %s847_s13  ;;  %s851_s8 = sshll.u32 %s922_s7, 4  ;;  %s852_s8 = int_to_ptr.vmem [resolvable:$false] %s851_s8 }
 0x24f   : > { %s853_s22 = scalar_lea.vmem %s852_s8, 512  ;;  %p854_p12 = scmp.lt.s32.totalorder %s1086_s6, %s852_s8 }
 0x250   : > { %p849_p10 = pnand %p848_p5, %p703_p9  ;;  %p855_p13 = scmp.lt.s32.totalorder %s853_s22, %s847_s13 }
 0x252   : > { %p850_p11 = pneg %p849_p10  ;;  %p856_p0 = por %p855_p13, %p854_p12 }
 0x254   : > { %p857_p1 = pnand %p856_p0, %p850_p11 }
 0x256   : > { %860 = shalt.err (!%p857_p1)
}
 0x257   : > { %s861_s9 = scalar_lea.hbm %s1084_s28, %s1075_s17  ;;  %s865_s12 = scalar_lea.hbm %s1134_s5, 384 }
 0x258   : > { %p862_p2 = scmp.ne.s32.totalorder %s1084_s28, %s861_s9  ;;  %p866_p7 = scmp.lt.s32.totalorder %s1084_s28, %s1134_s5 }
 0x259   : > { %p867_p6 = scmp.lt.s32.totalorder %s865_s12, %s861_s9 }
 0x25a   : > { %p863_p3 = pnand %p862_p2, %p703_p9 }
 0x25b   : > { %p868_p8 = por %p867_p6, %p866_p7 }
 0x25c   : > { %p864_p4 = pneg %p863_p3 }
 0x25e   : > { %p869_p5 = pnand %p868_p8, %p864_p4 }
 0x260   : > { %872 = shalt.err (!%p869_p5)
}
 0x261   : > { %s923_s23 = smov 128   ;;  %s924_s25 = smov 8  }
 0x262   : > { %600 = dma.vmem_to_hbm [thread:$0]  (%p703_p9), %s1086_s6, %s1075_s17, %s1084_s28, %s1070_s15, %s923_s23, %s923_s23, %s924_s25  }
 0x263 PF: > { %p754_p10 = scmp.ge.s32.totalorder %s911_s21, 2  ;;  %s609_s26 = sand.u32 1, %s899_s18  }
 0x264   : > { %p1138_p11 = scmp.ne.s32.totalorder %s1136_s29, 0  ;;  %s610_s30 = scalar_lea.sflag [#allocation4], %s609_s26 }
 0x266   : > { %p749_p12 = pnand %p754_p10, %p1138_p11 }
 0x268   : > { %p750_p13 = pneg %p749_p12 }
 0x26a   : > { %894 = dma.done.wait (%p750_p13), %s610_s30, 256  }
 0x26b   : > { %896 = vsyncadd (%p750_p13), %s610_s30, 4294967040  ;;  %p16_p0 = scmp.ge.s32.totalorder %s980_s24, 4   ;;  %s1139_s18 = smov %s903_s19 }
 0x26c   : > { %s1140_s19 = smov %s907_s20  ;;  %s1141_s20 = smov %s991_s27 }
 0x26d   : > { %s1142_s21 = smov %s980_s24  ;;  %18 = sbr.rel (!%p16_p0) target bundleno = 4 (0x4), region = 83 }
 0x272   :  { %615 = vsyncpa [#allocation3], 1 }
 0x273   :  { %617 = vsyncpa [#allocation3 + $0x1], 1 }
 0x274   :  { %618 = vsyncpa [#allocation4], 1 }
 0x275   :  { %620 = vsyncpa [#allocation4 + $0x1], 1 }

</bundles_post_ra>
